<compile_context>
chip_gen: v5e
topology: v5e:2x2
jax: 0.10.0
libtpu: 0.0.40
codegen_flags: <defaults>
</compile_context>

<pallas_src>
import functools

import jax
import jax.numpy as jnp
from jax import lax
from jax.experimental import pallas as pl
from jax.experimental.pallas import tpu as pltpu


def _rbf_kernel_ng(dist_ref, out_ref, *, start, step, coeff, num_gaussians):
    # dist_ref: (TM, 1) f32 tile; out_ref: (TM, G) tile (torch layout).
    d = dist_ref[...]                                              # (TM, 1)
    g = lax.broadcasted_iota(jnp.int32, (1, num_gaussians), 1)     # (1, G)
    offset = jnp.float32(start) + jnp.float32(step) * g.astype(jnp.float32)
    diff = d - offset                                              # (TM, G)
    out_ref[...] = jnp.exp(jnp.float32(coeff) * (diff * diff)).astype(out_ref.dtype)


def _rbf_kernel_gn(dist_ref, out_ref, *, start, step, coeff, num_gaussians):
    # dist_ref: (1, TN) f32 tile; out_ref: (G, TN) tile -- fully lane-dense.
    d = dist_ref[...]                                              # (1, TN)
    g = lax.broadcasted_iota(jnp.int32, (num_gaussians, 1), 0)     # (G, 1)
    offset = jnp.float32(start) + jnp.float32(step) * g.astype(jnp.float32)
    diff = d - offset                                              # (G, TN)
    out_ref[...] = jnp.exp(jnp.float32(coeff) * (diff * diff)).astype(out_ref.dtype)


def _round_up(x, m):
    return ((x + m - 1) // m) * m


def _pick_tile(n, max_tile, granule):
    # Full array if it fits in one granule; otherwise a granule multiple,
    # halved (rounded up) whenever <= 2 tiles cover N so both v7x TensorCores
    # get comparable work under dimension_semantics=("parallel",).
    if n <= granule:
        return n
    if n <= 2 * max_tile:
        return min(max_tile, _round_up(pl.cdiv(n, 2), granule))
    return max_tile


def rbf_expansion(dist, *, start=0.0, stop=5.0, num_gaussians=50,
                  tile=1024, out_dtype=jnp.float32, transposed_output=False):
    """Pallas equivalent of RBFExpansion.forward.

    dist: any-shaped float array with N = dist.size elements.
    Returns (N, num_gaussians) by default (torch layout), or
    (num_gaussians, N) if transposed_output=True (lane-dense fast path;
    transposing it back outside the kernel is layout plumbing only).
    """
    assert num_gaussians >= 2, "num_gaussians must be >= 2 (linspace step)"
    step = (stop - start) / (num_gaussians - 1)
    coeff = -0.5 / step ** 2

    n = dist.size
    out_bytes = jnp.dtype(out_dtype).itemsize
    cost = pl.CostEstimate(
        flops=3 * n * num_gaussians,
        transcendentals=n * num_gaussians,
        bytes_accessed=4 * n + n * num_gaussians * out_bytes)

    if transposed_output:
        # Lane-dense path: N on lanes, G on sublanes (50 -> 56, ~12% pad only).
        dist_row = dist.reshape(1, -1).astype(jnp.float32)
        tn = _pick_tile(n, tile, 128)
        grid = (pl.cdiv(n, tn),)
        kernel = functools.partial(
            _rbf_kernel_gn,
            start=start, step=step, coeff=coeff, num_gaussians=num_gaussians)
        return pl.pallas_call(
            kernel,
            out_shape=jax.ShapeDtypeStruct((num_gaussians, n), out_dtype),
            grid_spec=pltpu.PrefetchScalarGridSpec(
                num_scalar_prefetch=0,
                grid=grid,
                in_specs=[pl.BlockSpec((1, tn), lambda i: (0, i))],
                out_specs=pl.BlockSpec((num_gaussians, tn), lambda i: (0, i)),
            ),
            compiler_params=pltpu.CompilerParams(
                dimension_semantics=("parallel",)),
            cost_estimate=cost,
        )(dist_row)

    # Default torch-layout path: (N, G) written once, no padding, no re-slice.
    dist_col = dist.reshape(-1, 1).astype(jnp.float32)
    tm = _pick_tile(n, tile, 8)
    grid = (pl.cdiv(n, tm),)
    kernel = functools.partial(
        _rbf_kernel_ng,
        start=start, step=step, coeff=coeff, num_gaussians=num_gaussians)
    return pl.pallas_call(
        kernel,
        out_shape=jax.ShapeDtypeStruct((n, num_gaussians), out_dtype),
        grid_spec=pltpu.PrefetchScalarGridSpec(
            num_scalar_prefetch=0,
            grid=grid,
            in_specs=[pl.BlockSpec((tm, 1), lambda i: (i, 0))],
            out_specs=pl.BlockSpec((tm, num_gaussians), lambda i: (i, 0)),
        ),
        compiler_params=pltpu.CompilerParams(
            dimension_semantics=("parallel",)),
        cost_estimate=cost,
    )(dist_col)


def _reference(dist, start, stop, num_gaussians):
    # Plain-JAX mirror of the torch module (linspace offsets, f32 math).
    offset = jnp.linspace(start, stop, num_gaussians, dtype=jnp.float32)
    coeff = -0.5 / ((stop - start) / (num_gaussians - 1)) ** 2
    d = dist.reshape(-1, 1).astype(jnp.float32) - offset.reshape(1, -1)
    return jnp.exp(coeff * d * d)


if __name__ == "__main__":
    key = jax.random.PRNGKey(0)
    k1, k2, k3 = jax.random.split(key, 3)

    # Case 1: 8x8 pairwise-distance-like matrix -> 64 rows, default (N, G).
    dist = jax.random.uniform(k1, (8, 8), dtype=jnp.float32, minval=0.0, maxval=5.0)
    ref = _reference(dist, 0.0, 5.0, 50)
    out = jax.block_until_ready(rbf_expansion(dist))
    assert out.shape == (64, 50), out.shape
    assert jnp.allclose(out, ref, atol=5e-5), float(jnp.max(jnp.abs(out - ref)))

    # Case 2: ragged row count (21 rows) -> masked last block on the (N, G) path.
    dist2 = jax.random.uniform(k2, (3, 7), dtype=jnp.float32, minval=0.0, maxval=5.0)
    ref2 = _reference(dist2, 0.0, 5.0, 50)
    out2 = jax.block_until_ready(rbf_expansion(dist2))
    assert out2.shape == (21, 50), out2.shape
    assert jnp.allclose(out2, ref2, atol=5e-5), float(jnp.max(jnp.abs(out2 - ref2)))

    # Case 3: lane-dense fast path, (G, N) output, single block.
    out3 = jax.block_until_ready(rbf_expansion(dist, transposed_output=True))
    assert out3.shape == (50, 64), out3.shape
    assert jnp.allclose(out3.T, ref, atol=5e-5), float(jnp.max(jnp.abs(out3.T - ref)))

    # Case 4: lane-dense path with a 2-step balanced grid + ragged last block.
    dist4 = jax.random.uniform(k3, (20, 15), dtype=jnp.float32, minval=0.0, maxval=5.0)
    ref4 = _reference(dist4, 0.0, 5.0, 50)
    out4 = jax.block_until_ready(rbf_expansion(dist4, transposed_output=True))
    assert out4.shape == (50, 300), out4.shape
    assert jnp.allclose(out4.T, ref4, atol=5e-5), float(jnp.max(jnp.abs(out4.T - ref4)))

    # Case 5: bf16 output (v5e bandwidth recommendation), f32 math inside.
    out5 = jax.block_until_ready(
        rbf_expansion(dist, out_dtype=jnp.bfloat16, transposed_output=True))
    assert out5.shape == (50, 64), out5.shape
    assert jnp.allclose(out5.T.astype(jnp.float32), ref, atol=2e-2)

    print("KERNEL_OK")
</pallas_src>

<mosaic_0001>
module attributes {stable_mosaic.version = 11 : i64} {
  func.func @_rbf_kernel_ng(%arg0: i32, %arg1: memref<32x1xf32, #tpu.memory_space<vmem>>, %arg2: memref<32x50xf32, #tpu.memory_space<vmem>>) attributes {dimension_semantics = [#tpu.dimension_semantics<parallel>], iteration_bounds = array<i64: 2>, scalar_prefetch = 0 : i64, scratch_operands = 0 : i64, tpu.core_type = #tpu.core_type<tc>, window_params = [{transform_indices = @transform_0, window_bounds = array<i64: 32, 1>}, {transform_indices = @transform_1, window_bounds = array<i64: 32, 50>}]} {
    %c0 = arith.constant 0 : index
    %c0_0 = arith.constant 0 : index
    %0 = vector.load %arg1[%c0, %c0_0] : memref<32x1xf32, #tpu.memory_space<vmem>>, vector<32x1xf32>
    %1 = tpu.iota {dimensions = array<i32: 1>} : vector<1x50xi32>
    %2 = arith.sitofp %1 : vector<1x50xi32> to vector<1x50xf32>
    %cst = arith.constant 0.10204082 : f32
    %3 = vector.broadcast %cst : f32 to vector<1x50xf32>
    %4 = arith.mulf %3, %2 : vector<1x50xf32>
    %cst_1 = arith.constant 0.000000e+00 : f32
    %5 = vector.broadcast %cst_1 : f32 to vector<1x50xf32>
    %6 = arith.addf %5, %4 : vector<1x50xf32>
    %7 = vector.broadcast %0 : vector<32x1xf32> to vector<32x50xf32>
    %8 = vector.broadcast %6 : vector<1x50xf32> to vector<32x50xf32>
    %9 = arith.subf %7, %8 : vector<32x50xf32>
    %10 = arith.mulf %9, %9 : vector<32x50xf32>
    %cst_2 = arith.constant -4.802000e+01 : f32
    %11 = vector.broadcast %cst_2 : f32 to vector<32x50xf32>
    %12 = arith.mulf %11, %10 : vector<32x50xf32>
    %13 = math.exp %12 : vector<32x50xf32>
    %c0_3 = arith.constant 0 : index
    %c0_4 = arith.constant 0 : index
    %14 = vector.load %arg2[%c0_3, %c0_4] : memref<32x50xf32, #tpu.memory_space<vmem>>, vector<32x50xf32>
    tpu.vector_store %arg2[%c0_3, %c0_4], %13 {strides = array<i32>} : memref<32x50xf32, #tpu.memory_space<vmem>>, vector<32x50xf32>,
    return
  }
  func.func @transform_0(%arg0: i32) -> (i32, i32) {
    %c0_i32 = arith.constant 0 : i32
    %c0_i32_0 = arith.constant 0 : i32
    return %arg0, %c0_i32 : i32, i32
  }
  func.func @transform_1(%arg0: i32) -> (i32, i32) {
    %c0_i32 = arith.constant 0 : i32
    %c0_i32_0 = arith.constant 0 : i32
    return %arg0, %c0_i32 : i32, i32
  }
}

</mosaic_0001>

<bundles_post_ra>
// kernel: tpu_custom_call.1
= control target key start
LH: loop header
LB: loop body
LE: loop exit
PB: predicated region body
PF: predicated region fallthrough
CT: control target
= control target key end

     0   :  { %s279_s6 = smov 0   ;;  %s303_s0 = inlined_call_operand.vmem [shape: f32[64,1], index: 0, kind: input, shape index: {}]   ;;  %s304_s1 = inlined_call_operand.vmem [shape: f32[64,50], index: 1, kind: output, shape index: {}]  }
   0x1 LB: > { %s230_s7 = sadd.s32 4294967295, %s266_s6   ;;  %p234_p0 = scmp.ge.s32.totalorder %s266_s6, 1  ;;  %s266_s6 = sphi %s279_s6, %s11_s6  }
   0x2   : > { %p88_p1 = scmp.lt.s32.totalorder %s266_s6, 3 }
   0x4   : > { %p89_p2 = pnand %p234_p0, %p88_p1 }
   0x5   : > { %s235_s8 = sshll.u32 (!%p89_p2), %s230_s7, 2 }
   0x6   : > { %92 = sbr.rel (%p89_p2) target bundleno = 156 (0x9c), region = 24  ;;  %p109_p3 = scmp.lt.s32.totalorder (!%p89_p2), %s235_s8, 7 }
   0xb   : > { %v268_v0 = vmov 0   ;;  %s306_s8 = smov (!%p109_p3, %s235_s8), 7  ;;  %v124_v5 = vlaneseq  ;;  %vm169_vm0 = vcmask 408576  }
   0xc   : > { %251 = vset.pattern.permute.xlu1 %v268_v0  ;;  %250 = vset.pattern.permute.xlu0 %v268_v0  ;;  %s236_s9 = sshll.u32 %s306_s8, 3 }
   0xd   : > { %s112_s12 = scalar_lea.vmem %s303_s0, %s236_s9  ;;  %v125_v6 = vand.u32 127, %v124_v5  ;;  %s118_s15 = scalar_lea.vmem %s304_s1, %s236_s9 }
   0xe   : > { %v122_v1 = vld [vmem:[%s112_s12 + $0x10] sm:$0xff]  ;;  %v120_v2 = vld [vmem:[%s112_s12] sm:$0xff]  ;;  %v123_v3 = vld [vmem:[%s112_s12 + $0x18] sm:$0xff] }
   0xf   : > { %141 = vperm.xlu1 %251, %v122_v1   ;;  %131 = vperm.xlu0 %250, %v120_v2   ;;  %v121_v4 = vld [vmem:[%s112_s12 + $0x8] sm:$0xff]  ;;  %v126_v7 = vcvt.s32.f32 %v125_v6 }
  0x11   : > { %v127_v8 = vmul.f32 0.10204082, %v126_v7 }
  0x17   : > { %146 = vperm.xlu1 %251, %v123_v3   ;;  %136 = vperm.xlu0 %250, %v121_v4  }
  0x81   : > { %v142_v9 = vpop.permute.xlu1 %141  ;;  %v132_v10 = vpop.permute.xlu0 %131 }
  0x82   : > { %v149_v11 = vsub.f32 %v132_v10, %v127_v8  ;;  %v151_v12 = vsub.f32 %v142_v9, %v127_v8 }
  0x84   : > { %v153_v13 = vmul.f32 %v149_v11, %v149_v11  ;;  %v155_v15 = vmul.f32 %v151_v12, %v151_v12 }
  0x86   : > { %v157_v14 = vmul.f32 -48.02, %v153_v13  ;;  %v159_v21 = vmul.f32 -48.02, %v155_v15 }
  0x88   : > { %v161_v16 = vmul.f32 1.442695, %v157_v14  ;;  %v165_v26 = vmul.f32 1.442695, %v159_v21 }
  0x89   : > { %v147_v17 = vpop.permute.xlu1 %146  ;;  %v137_v18 = vpop.permute.xlu0 %136 }
  0x8a   : > { %v152_v19 = vsub.f32 %v147_v17, %v127_v8  ;;  %v150_v20 = vsub.f32 %v137_v18, %v127_v8  ;;  %252 = vpow2.f32 %v161_v16 }
  0x8c   : > { %v156_v22 = vmul.f32 %v152_v19, %v152_v19  ;;  %v154_v23 = vmul.f32 %v150_v20, %v150_v20 }
  0x8e   : > { %v160_v24 = vmul.f32 -48.02, %v156_v22  ;;  %v158_v25 = vmul.f32 -48.02, %v154_v23 }
  0x90   : > { %v163_v27 = vmul.f32 1.442695, %v158_v25  ;;  %v253_v28 = vpop.eup %252  ;;  %v167_v29 = vmul.f32 1.442695, %v160_v24 }
  0x91   : > { %170 = vst.msk [vmem:[%s118_s15] sm:$0xff] %vm169_vm0, %v253_v28 }
  0x92   : > { %254 = vpow2.f32 %v163_v27 }
  0x93   : > { %256 = vpow2.f32 %v165_v26 }
  0x94   : > { %258 = vpow2.f32 %v167_v29 }
  0x98   : > { %v255_v30 = vpop.eup %254 }
  0x99   : > { %v257_v31 = vpop.eup %256  ;;  %171 = vst.msk [vmem:[%s118_s15 + $0x8] sm:$0xff] %vm169_vm0, %v255_v30 }
  0x9a   : > { %v259_v32 = vpop.eup %258  ;;  %172 = vst.msk [vmem:[%s118_s15 + $0x10] sm:$0xff] %vm169_vm0, %v257_v31 }
  0x9b   : > { %173 = vst.msk [vmem:[%s118_s15 + $0x18] sm:$0xff] %vm169_vm0, %v259_v32 }
  0x9c PF: > { %s11_s6 = sadd.s32 1, %s266_s6  }
  0x9d   : > { %p8_p4 = scmp.ge.s32.totalorder %s11_s6, 4  }
  0x9f   :  { %10 = sbr.rel (!%p8_p4) target bundleno = 1 (0x1), region = 54 }

</bundles_post_ra>
